<compile_context>
chip_gen: v6e
topology: v6e:2x2x1
jax: 0.10.0
libtpu: 0.0.40
codegen_flags: <defaults>
</compile_context>

<pallas_src>
import functools

import jax
import jax.numpy as jnp
from jax.experimental import pallas as pl
from jax.experimental.pallas import tpu as pltpu


def _round_up(x, m):
    return ((x + m - 1) // m) * m


# ---------------------------------------------------------------------------
# Kernel
# ---------------------------------------------------------------------------
def _fused_mlp_kernel(*refs, num_hidden):
    """Push one M-tile through every layer; activations stay on-chip.

    refs (num_hidden > 0):
        x_ref (TILE_M, D), w_ref (Lh, D, D) bf16, b_ref (Lh, 1, D) f32,
        wl_ref (D, Do) bf16, bl_ref (1, Do) f32, o_ref (TILE_M, Do)
    refs (num_hidden == 0): x_ref, wl_ref, bl_ref, o_ref
    """
    if num_hidden > 0:
        x_ref, w_ref, b_ref, wl_ref, bl_ref, o_ref = refs
    else:
        x_ref, wl_ref, bl_ref, o_ref = refs
        w_ref = b_ref = None

    h = x_ref[...].astype(jnp.float32)
    for layer in range(num_hidden):            # static unroll: L is tiny
        y = jnp.dot(h.astype(jnp.bfloat16), w_ref[layer],
                    preferred_element_type=jnp.float32)
        h = jnp.maximum(y + b_ref[layer], 0.0)   # f32 epilogue (VPU-safe on v5e)
    out = jnp.dot(h.astype(jnp.bfloat16), wl_ref[...],
                  preferred_element_type=jnp.float32) + bl_ref[...]
    o_ref[...] = out.astype(o_ref.dtype)


# ---------------------------------------------------------------------------
# One-time parameter packing (hoisted out of the per-call path)
# ---------------------------------------------------------------------------
def prepare_mlp_params(params):
    """Pad + stack weights once.

    params: list of (w, b) with w of shape (in, out), b of shape (out,).
    Returns a dict consumed by mlp_forward. Hidden weights are stacked into a
    single bf16 (Lh, d_pad, d_pad) slab; the last layer keeps its own
    (d_pad, out_d_pad) shape so the output stays narrow.
    """
    num_layers = len(params)
    in_dim = params[0][0].shape[0]
    out_dim = params[-1][0].shape[1]

    # Common lane-dense width for input + hidden feature dims (not output).
    feat_dims = [in_dim] + [w.shape[1] for (w, _) in params[:-1]]
    # Gate 256-alignment on large D (only useful once MXU-bound on v6e/v7x).
    lane = 256 if max(feat_dims) >= 1024 else 128
    d_pad = max(_round_up(d, lane) for d in feat_dims)
    out_d_pad = _round_up(out_dim, 128)

    # Zero-padded rows/cols contribute 0 and ReLU(0) = 0, so padded feature
    # lanes stay exactly zero layer to layer.
    if num_layers > 1:
        w_stack = jnp.stack([
            jnp.zeros((d_pad, d_pad), jnp.float32)
               .at[:w.shape[0], :w.shape[1]].set(w)
            for (w, _) in params[:-1]
        ]).astype(jnp.bfloat16)
        b_stack = jnp.stack([
            jnp.zeros((1, d_pad), jnp.float32).at[0, :b.shape[0]].set(b)
            for (_, b) in params[:-1]
        ])
    else:
        w_stack = None
        b_stack = None

    w_last, b_last = params[-1]
    w_last_p = (jnp.zeros((d_pad, out_d_pad), jnp.float32)
                   .at[:w_last.shape[0], :w_last.shape[1]].set(w_last)
                   .astype(jnp.bfloat16))
    b_last_p = jnp.zeros((1, out_d_pad), jnp.float32).at[0, :b_last.shape[0]].set(b_last)

    return dict(
        num_layers=num_layers, in_dim=in_dim, out_dim=out_dim,
        d_pad=d_pad, out_d_pad=out_d_pad,
        w_stack=w_stack, b_stack=b_stack, w_last=w_last_p, b_last=b_last_p,
    )


# ---------------------------------------------------------------------------
# Wrapper
# ---------------------------------------------------------------------------
def _const_spec(shape):
    """Constant-index-map BlockSpec, single-buffered when supported."""
    idx_map = lambda i: (0,) * len(shape)
    try:
        return pl.BlockSpec(shape, idx_map, pipeline_mode=pl.Buffered(1))
    except TypeError:  # older jax without pipeline_mode kwarg
        return pl.BlockSpec(shape, idx_map)


def mlp_forward(x, packed, *, tile_m=512):
    """Forward pass matching torch: relu(linear) for all layers but the last."""
    num_layers = packed["num_layers"]
    num_hidden = num_layers - 1
    in_dim = packed["in_dim"]
    out_dim = packed["out_dim"]
    d_pad = packed["d_pad"]
    out_d_pad = packed["out_d_pad"]

    orig_shape = x.shape
    x2d = x.reshape(-1, in_dim)
    M = x2d.shape[0]

    # Sublane-aligned M tile; clamp so the grid keeps >= 2 steps when M allows
    # (so v7x can shard the parallel axis across both TensorCores).
    tm = max(8, min(tile_m, _round_up(pl.cdiv(M, 2), 8)))
    m_pad = _round_up(M, tm)
    grid = (m_pad // tm,)

    # Skip the pad copy in the common production case.
    if M == m_pad and in_dim == d_pad:
        x_p = x2d
    else:
        x_p = jnp.zeros((m_pad, d_pad), x2d.dtype).at[:M, :in_dim].set(x2d)

    x_spec = pl.BlockSpec((tm, d_pad), lambda i: (i, 0))
    out_spec = pl.BlockSpec((tm, out_d_pad), lambda i: (i, 0))
    wl_spec = _const_spec((d_pad, out_d_pad))
    bl_spec = _const_spec((1, out_d_pad))

    if num_hidden > 0:
        in_specs = [x_spec,
                    _const_spec((num_hidden, d_pad, d_pad)),
                    _const_spec((num_hidden, 1, d_pad)),
                    wl_spec, bl_spec]
        operands = (x_p, packed["w_stack"], packed["b_stack"],
                    packed["w_last"], packed["b_last"])
    else:
        in_specs = [x_spec, wl_spec, bl_spec]
        operands = (x_p, packed["w_last"], packed["b_last"])

    # VMEM footprint: double-buffered x/out tiles + single-buffered weights.
    x_bytes = jnp.dtype(x2d.dtype).itemsize
    footprint = (2 * tm * d_pad * x_bytes
                 + 2 * tm * out_d_pad * x_bytes
                 + num_hidden * d_pad * d_pad * 2      # bf16 hidden weights
                 + num_hidden * d_pad * 4              # f32 hidden biases
                 + d_pad * out_d_pad * 2               # bf16 last weight
                 + out_d_pad * 4)                      # f32 last bias
    vmem_limit = min(max(int(1.5 * footprint) + (2 << 20), 4 << 20), 100 << 20)

    flops = 2 * m_pad * d_pad * (d_pad * num_hidden + out_d_pad)
    bytes_accessed = (x_p.size * x_bytes
                      + num_hidden * d_pad * d_pad * 2 + num_hidden * d_pad * 4
                      + d_pad * out_d_pad * 2 + out_d_pad * 4
                      + m_pad * out_d_pad * x_bytes)

    kernel = functools.partial(_fused_mlp_kernel, num_hidden=num_hidden)

    out_p = pl.pallas_call(
        kernel,
        out_shape=jax.ShapeDtypeStruct((m_pad, out_d_pad), x2d.dtype),
        grid=grid,
        in_specs=in_specs,
        out_specs=out_spec,
        compiler_params=pltpu.CompilerParams(
            dimension_semantics=("parallel",),
            vmem_limit_bytes=vmem_limit,
        ),
        cost_estimate=pl.CostEstimate(
            flops=flops, transcendentals=0, bytes_accessed=bytes_accessed),
    )(*operands)

    # Skip the slice when nothing was padded.
    if M == m_pad and out_dim == out_d_pad:
        out2d = out_p
    else:
        out2d = out_p[:M, :out_dim]
    return out2d.reshape(*orig_shape[:-1], out_dim)


# ---------------------------------------------------------------------------
# Parameter init mirroring torch.nn.Linear defaults
# ---------------------------------------------------------------------------
def init_mlp_params(key, input_dim, hidden_dim, output_dim, num_layers):
    h = [hidden_dim] * (num_layers - 1)
    dims_in = [input_dim] + h
    dims_out = h + [output_dim]
    params = []
    for n_in, n_out in zip(dims_in, dims_out):
        key, kw, kb = jax.random.split(key, 3)
        bound = 1.0 / jnp.sqrt(jnp.float32(n_in))
        # Stored as (in, out): equivalent to torch's (out, in) transposed.
        w = jax.random.uniform(kw, (n_in, n_out), jnp.float32, -bound, bound)
        b = jax.random.uniform(kb, (n_out,), jnp.float32, -bound, bound)
        params.append((w, b))
    return params


if __name__ == "__main__":
    key = jax.random.PRNGKey(0)
    k_in, k_params = jax.random.split(key)

    # Small shapes consistent with DETR's MLP usage (e.g. bbox head on query embeds):
    batch, seq, input_dim, hidden_dim, output_dim, num_layers = 2, 8, 16, 32, 4, 3

    x = jax.random.normal(k_in, (batch, seq, input_dim), dtype=jnp.float32)
    params = init_mlp_params(k_params, input_dim, hidden_dim, output_dim, num_layers)

    # One-time packing (pad + stack + bf16 cast), hoisted out of the call path.
    packed = prepare_mlp_params(params)

    out = mlp_forward(x, packed)
    out = jax.block_until_ready(out)

    # Reference in plain f32 JAX. Kernel uses bf16 MXU operands with f32
    # accumulation, so tolerance is loosened accordingly.
    ref = x.reshape(-1, input_dim)
    for i, (w, b) in enumerate(params):
        ref = ref @ w + b
        if i < num_layers - 1:
            ref = jnp.maximum(ref, 0.0)
    ref = ref.reshape(batch, seq, output_dim)
    assert out.shape == (batch, seq, output_dim)
    assert jnp.allclose(out, ref, atol=2e-2, rtol=2e-2), (
        float(jnp.max(jnp.abs(out - ref))))

    print("KERNEL_OK")
</pallas_src>

<mosaic_0001>
module attributes {stable_mosaic.version = 11 : i64} {
  func.func @_fused_mlp_kernel(%arg0: i32, %arg1: memref<8x128xf32, #tpu.memory_space<vmem>>, %arg2: memref<2x128x128xbf16, #tpu.memory_space<vmem>>, %arg3: memref<2x1x128xf32, #tpu.memory_space<vmem>>, %arg4: memref<128x128xbf16, #tpu.memory_space<vmem>>, %arg5: memref<1x128xf32, #tpu.memory_space<vmem>>, %arg6: memref<8x128xf32, #tpu.memory_space<vmem>>) attributes {dimension_semantics = [#tpu.dimension_semantics<parallel>], iteration_bounds = array<i64: 2>, scalar_prefetch = 0 : i64, scratch_operands = 0 : i64, tpu.core_type = #tpu.core_type<tc>, window_params = [{transform_indices = @transform_0, window_bounds = array<i64: 8, 128>}, {pipeline_mode = #tpu.pipeline_mode<synchronous>, transform_indices = @transform_1, window_bounds = array<i64: 2, 128, 128>}, {pipeline_mode = #tpu.pipeline_mode<synchronous>, transform_indices = @transform_2, window_bounds = array<i64: 2, 1, 128>}, {pipeline_mode = #tpu.pipeline_mode<synchronous>, transform_indices = @transform_3, window_bounds = array<i64: 128, 128>}, {pipeline_mode = #tpu.pipeline_mode<synchronous>, transform_indices = @transform_4, window_bounds = array<i64: 1, 128>}, {transform_indices = @transform_5, window_bounds = array<i64: 8, 128>}]} {
    %c0 = arith.constant 0 : index
    %c0_0 = arith.constant 0 : index
    %0 = vector.load %arg1[%c0, %c0_0] : memref<8x128xf32, #tpu.memory_space<vmem>>, vector<8x128xf32>
    %1 = arith.truncf %0 : vector<8x128xf32> to vector<8x128xbf16>
    %c0_1 = arith.constant 0 : index
    %c0_2 = arith.constant 0 : index
    %c0_3 = arith.constant 0 : index
    %2 = vector.load %arg2[%c0_1, %c0_2, %c0_3] : memref<2x128x128xbf16, #tpu.memory_space<vmem>>, vector<1x128x128xbf16>
    %3 = vector.shape_cast %2 : vector<1x128x128xbf16> to vector<128x128xbf16>
    %cst = arith.constant dense<0.000000e+00> : vector<8x128xf32>
    %4 = tpu.matmul %1, %3, %cst {dimension_numbers = #tpu.dot_dimension_numbers<[1], [0], [0], [1], [0, 0, 1, 1], [], []>} : vector<8x128xbf16>, vector<128x128xbf16>, vector<8x128xf32> -> vector<8x128xf32>
    %c0_4 = arith.constant 0 : index
    %c0_5 = arith.constant 0 : index
    %c0_6 = arith.constant 0 : index
    %5 = vector.load %arg3[%c0_4, %c0_5, %c0_6] : memref<2x1x128xf32, #tpu.memory_space<vmem>>, vector<1x1x128xf32>
    %6 = vector.shape_cast %5 : vector<1x1x128xf32> to vector<1x128xf32>
    %7 = vector.broadcast %6 : vector<1x128xf32> to vector<8x128xf32>
    %8 = arith.addf %4, %7 : vector<8x128xf32>
    %cst_7 = arith.constant 0.000000e+00 : f32
    %9 = vector.broadcast %cst_7 : f32 to vector<8x128xf32>
    %10 = arith.maximumf %8, %9 : vector<8x128xf32>
    %11 = arith.truncf %10 : vector<8x128xf32> to vector<8x128xbf16>
    %c1 = arith.constant 1 : index
    %c0_8 = arith.constant 0 : index
    %c0_9 = arith.constant 0 : index
    %12 = vector.load %arg2[%c1, %c0_8, %c0_9] : memref<2x128x128xbf16, #tpu.memory_space<vmem>>, vector<1x128x128xbf16>
    %13 = vector.shape_cast %12 : vector<1x128x128xbf16> to vector<128x128xbf16>
    %cst_10 = arith.constant dense<0.000000e+00> : vector<8x128xf32>
    %14 = tpu.matmul %11, %13, %cst_10 {dimension_numbers = #tpu.dot_dimension_numbers<[1], [0], [0], [1], [0, 0, 1, 1], [], []>} : vector<8x128xbf16>, vector<128x128xbf16>, vector<8x128xf32> -> vector<8x128xf32>
    %c1_11 = arith.constant 1 : index
    %c0_12 = arith.constant 0 : index
    %c0_13 = arith.constant 0 : index
    %15 = vector.load %arg3[%c1_11, %c0_12, %c0_13] : memref<2x1x128xf32, #tpu.memory_space<vmem>>, vector<1x1x128xf32>
    %16 = vector.shape_cast %15 : vector<1x1x128xf32> to vector<1x128xf32>
    %17 = vector.broadcast %16 : vector<1x128xf32> to vector<8x128xf32>
    %18 = arith.addf %14, %17 : vector<8x128xf32>
    %cst_14 = arith.constant 0.000000e+00 : f32
    %19 = vector.broadcast %cst_14 : f32 to vector<8x128xf32>
    %20 = arith.maximumf %18, %19 : vector<8x128xf32>
    %21 = arith.truncf %20 : vector<8x128xf32> to vector<8x128xbf16>
    %c0_15 = arith.constant 0 : index
    %c0_16 = arith.constant 0 : index
    %22 = vector.load %arg4[%c0_15, %c0_16] : memref<128x128xbf16, #tpu.memory_space<vmem>>, vector<128x128xbf16>
    %cst_17 = arith.constant dense<0.000000e+00> : vector<8x128xf32>
    %23 = tpu.matmul %21, %22, %cst_17 {dimension_numbers = #tpu.dot_dimension_numbers<[1], [0], [0], [1], [0, 0, 1, 1], [], []>} : vector<8x128xbf16>, vector<128x128xbf16>, vector<8x128xf32> -> vector<8x128xf32>
    %c0_18 = arith.constant 0 : index
    %c0_19 = arith.constant 0 : index
    %24 = vector.load %arg5[%c0_18, %c0_19] : memref<1x128xf32, #tpu.memory_space<vmem>>, vector<1x128xf32>
    %25 = vector.broadcast %24 : vector<1x128xf32> to vector<8x128xf32>
    %26 = arith.addf %23, %25 : vector<8x128xf32>
    %c0_20 = arith.constant 0 : index
    %c0_21 = arith.constant 0 : index
    %27 = vector.load %arg6[%c0_20, %c0_21] : memref<8x128xf32, #tpu.memory_space<vmem>>, vector<8x128xf32>
    tpu.vector_store %arg6[%c0_20, %c0_21], %26 {strides = array<i32>} : memref<8x128xf32, #tpu.memory_space<vmem>>, vector<8x128xf32>,
    return
  }
  func.func @transform_0(%arg0: i32) -> (i32, i32) {
    %c0_i32 = arith.constant 0 : i32
    %c0_i32_0 = arith.constant 0 : i32
    return %arg0, %c0_i32 : i32, i32
  }
  func.func @transform_1(%arg0: i32) -> (i32, i32, i32) {
    %c0_i32 = arith.constant 0 : i32
    %c0_i32_0 = arith.constant 0 : i32
    %c0_i32_1 = arith.constant 0 : i32
    %c0_i32_2 = arith.constant 0 : i32
    return %c0_i32, %c0_i32_0, %c0_i32_1 : i32, i32, i32
  }
  func.func @transform_2(%arg0: i32) -> (i32, i32, i32) {
    %c0_i32 = arith.constant 0 : i32
    %c0_i32_0 = arith.constant 0 : i32
    %c0_i32_1 = arith.constant 0 : i32
    %c0_i32_2 = arith.constant 0 : i32
    return %c0_i32, %c0_i32_0, %c0_i32_1 : i32, i32, i32
  }
  func.func @transform_3(%arg0: i32) -> (i32, i32) {
    %c0_i32 = arith.constant 0 : i32
    %c0_i32_0 = arith.constant 0 : i32
    %c0_i32_1 = arith.constant 0 : i32
    return %c0_i32, %c0_i32_0 : i32, i32
  }
  func.func @transform_4(%arg0: i32) -> (i32, i32) {
    %c0_i32 = arith.constant 0 : i32
    %c0_i32_0 = arith.constant 0 : i32
    %c0_i32_1 = arith.constant 0 : i32
    return %c0_i32, %c0_i32_0 : i32, i32
  }
  func.func @transform_5(%arg0: i32) -> (i32, i32) {
    %c0_i32 = arith.constant 0 : i32
    %c0_i32_0 = arith.constant 0 : i32
    return %arg0, %c0_i32 : i32, i32
  }
}

</mosaic_0001>

<bundles_post_ra>
// kernel: tpu_custom_call.1
= control target key start
LH: loop header
LB: loop body
LE: loop exit
PB: predicated region body
PF: predicated region fallthrough
CT: control target
= control target key end

     0   :  { %10 = vsyncpa [#allocation3], 0  ;;  %s1352_s0 = inlined_call_operand.hbm [shape: f32[16,128], index: 0, kind: input, shape index: {}]   ;;  %s1353_s1 = inlined_call_operand.hbm [shape: bf16[2,128,128], index: 1, kind: input, shape index: {}]   ;;  %s1354_s2 = inlined_call_operand.vmem [shape: f32[2,1,128], index: 2, kind: input, shape index: {}]   ;;  %s1355_s3 = inlined_call_operand.hbm [shape: bf16[128,128], index: 3, kind: input, shape index: {}]   ;;  %s1356_s4 = inlined_call_operand.vmem [shape: f32[1,128], index: 4, kind: input, shape index: {}]   ;;  %s1357_s5 = inlined_call_operand.hbm [shape: f32[16,128], index: 5, kind: output, shape index: {}]  }
   0x1   :  { %12 = vsyncpa [#allocation3 + $0x1], 0 }
   0x2   :  { %13 = vsyncpa [#allocation6], 0 }
   0x3   :  { %14 = vsyncpa [#allocation4], 0 }
   0x4   :  { %16 = vsyncpa [#allocation4 + $0x1], 0  ;;  %s1129_s18 = smov 0   ;;  %s1131_s19 = smov 0  }
   0x5   :  { %s1133_s20 = smov 0   ;;  %s1135_s21 = smov 0  }
   0x6 LB: > { %s1150_s22 = sadd.s32 4294967295, %s1089_s21   ;;  %s715_s23 = sadd.s32 4294967294, %s1089_s21   ;;  %s1089_s21 = sphi %s1135_s21, %s1379_s21   ;;  %s1085_s20 = sphi %s1133_s20, %s1378_s20   ;;  %s1081_s19 = sphi %s1131_s19, %s1377_s19   ;;  %s1077_s18 = sphi %s1129_s18, %s1376_s18  }
   0x7   : > { %p42_p0 = scmp.ne.s32.totalorder %s1081_s19, %s1077_s18  ;;  %p1358_p1 = scmp.eq.s32.totalorder %s1150_s22, 0 }
   0x8   : > { %p156_p3 = scmp.eq.s32.totalorder %s715_s23, 1  ;;  %p716_p5 = scmp.ge.s32.totalorder %s1089_s21, 1 }
   0x9   : > { %p1159_p4 = por %p1358_p1, %p42_p0  ;;  %p163_p7 = scmp.lt.s32.totalorder %s1089_s21, 3 }
   0xa   : > { %p1164_p6 = por %p156_p3, %p42_p0  ;;  %s1091_s27 = smov [#allocation5]  }
   0xb   : > { %s1362_s24 = scalar_select %p1159_p4, 1, 0 }
   0xc   : > { %s1363_s25 = scalar_select %p1164_p6, 1, 0 }
   0xd   : > { %p1169_p8 = pnand %p716_p5, %p163_p7  ;;  %s175_s28 = sshll.u32 %s1091_s27, 4  ;;  %s176_s28 = int_to_ptr.vmem [resolvable:$true] %s175_s28 }
   0xe   : > { %s1092_s30 = smov [#allocation7]   ;;  %s952_s7 = scalar_lea.vmem %s176_s28, 2048 }
   0xf   : > { %s1364_s26 = scalar_select %p1169_p8, 1, 0 }
  0x10   : > { %p858_p9 = pneg %p1169_p8  ;;  %s191_s6 = sshll.u32 %s1092_s30, 4  ;;  %s192_s6 = int_to_ptr.vmem [resolvable:$true] %s191_s6 }
  0x11   : > { %p953_p13 = scmp.ne.s32.totalorder %s176_s28, %s952_s7  ;;  %p960_p5 = scmp.lt.s32.totalorder %s176_s28, %s176_s28 }
  0x12   : > { %p1178_p11 = pnand %p858_p9, %p1358_p1  ;;  %p961_p7 = scmp.lt.s32.totalorder %s952_s7, %s952_s7 }
  0x14   : > { %p943_p12 = pneg %p1178_p11  ;;  %p962_p10 = por %p961_p7, %p960_p5 }
  0x16   : > { %p955_p0 = pnand %p953_p13, %p943_p12 }
  0x18   : > { %p956_p3 = pneg %p955_p0 }
  0x1a   : > { %p963_p9 = pnand %p962_p10, %p956_p3 }
  0x1c   : > { %966 = shalt.err (!%p963_p9)
}
  0x1d   : > { %s1093_s8 = smov 64   ;;  %s1094_s9 = smov 4  }
  0x1e   : > { %861 = dma.hbm_to_vmem [thread:$0]  (!%p1178_p11), %s1353_s1, 2048, %s176_s28, [#allocation6], %s1093_s8, %s1093_s8, %s1094_s9  }
  0x1f   : > { %s978_s12 = scalar_lea.vmem %s192_s6, 1024  ;;  %p986_p2 = scmp.lt.s32.totalorder %s192_s6, %s192_s6 }
  0x20   : > { %p979_p1 = scmp.ne.s32.totalorder %s192_s6, %s978_s12  ;;  %p987_p6 = scmp.lt.s32.totalorder %s978_s12, %s978_s12 }
  0x22   : > { %p981_p13 = pnand %p979_p1, %p943_p12  ;;  %p988_p5 = por %p987_p6, %p986_p2 }
  0x24   : > { %p982_p0 = pneg %p981_p13 }
  0x26   : > { %p989_p10 = pnand %p988_p5, %p982_p0 }
  0x28   : > { %992 = shalt.err (!%p989_p10)
}
  0x29   : > { %864 = dma.hbm_to_vmem [thread:$0]  (!%p1178_p11), %s1355_s3, 1024, %s192_s6, [#allocation6], %s1093_s8, %s1093_s8, %s1094_s9  }
  0x2a   : > { %s1201_s15 = sadd.s32 1, %s1089_s21   ;;  %s29_s16 = sadd.s32 1, %s1085_s20 }
  0x2b   : > { %s26_s17 = ssub.s32 %s1089_s21, %s1201_s15  ;;  %p36_p1 = scmp.ne.s32.totalorder %s1085_s20, %s1081_s19 }
  0x2c   : > { %p27_p2 = scmp.eq.s32.totalorder %s26_s17, 0  ;;  %p37_p6 = scmp.eq.s32.totalorder %s1089_s21, 0 }
  0x2d   : > { %p1366_p12 = scmp.eq.s32.totalorder %s1150_s22, 1  ;;  %p875_p7 = scmp.lt.s32.totalorder %s1089_s21, 2 }
  0x2e   : > { %s1217_s27 = scalar_select %p27_p2, %s1085_s20, %s29_s16  }
  0x2f   : > { %p1211_p3 = por %p1366_p12, %p36_p1  ;;  %p38_p9 = por %p37_p6, %p36_p1 }
  0x30   : > { %s208_s28 = sand.u32 1, %s1085_s20   ;;  %s721_s30 = sshll.u32 %s1089_s21, 7 }
  0x31   : > { %s1367_s23 = scalar_select %p1211_p3, 1, 0 }
  0x32   : > { %s720_s29 = sshll.u32 %s208_s28, 3  ;;  %s1224_s8 = scalar_lea.hbm %s1352_s0, %s721_s30 }
  0x33   : > { %s212_s9 = scalar_lea.vmem [#allocation2], %s720_s29  ;;  %p1226_p11 = pnand %p875_p7, %p38_p9 }
  0x34   : > { %s219_s10 = sshll.u32 %s212_s9, 4  ;;  %s209_s12 = scalar_lea.sflag [#allocation3], %s208_s28  ;;  %s220_s10 = int_to_ptr.vmem [resolvable:$true] %s219_s10 }
  0x35   : > { %s993_s13 = scalar_lea.hbm %s1224_s8, 128  ;;  %p995_p0 = pneg %p1226_p11 }
  0x36   : > { %p994_p13 = scmp.ne.s32.totalorder %s1224_s8, %s993_s13  ;;  %s998_s17 = scalar_lea.hbm %s1352_s0, 256 }
  0x37   : > { %p999_p1 = scmp.lt.s32.totalorder %s1224_s8, %s1352_s0  ;;  %p1000_p2 = scmp.lt.s32.totalorder %s998_s17, %s993_s13 }
  0x38   : > { %p996_p5 = pnand %p995_p0, %p994_p13 }
  0x39   : > { %p1001_p6 = por %p1000_p2, %p999_p1 }
  0x3a   : > { %p997_p10 = pneg %p996_p5 }
  0x3c   : > { %p1002_p12 = pnand %p1001_p6, %p997_p10 }
  0x3e   : > { %1005 = shalt.err (!%p1002_p12)
}
  0x3f   : > { %s1006_s6 = scalar_lea.vmem %s220_s10, 128  ;;  %s1095_s28 = smov [#allocation2]  }
  0x40   : > { %p1007_p7 = scmp.ne.s32.totalorder %s220_s10, %s1006_s6  ;;  %s1011_s7 = sshll.u32 %s1095_s28, 4  ;;  %s1012_s7 = int_to_ptr.vmem [resolvable:$false] %s1011_s7 }
  0x41   : > { %s1013_s9 = scalar_lea.vmem %s1012_s7, 256  ;;  %p1014_p13 = scmp.lt.s32.totalorder %s220_s10, %s1012_s7 }
  0x42   : > { %p1009_p9 = pnand %p1007_p7, %p995_p0  ;;  %p1015_p5 = scmp.lt.s32.totalorder %s1013_s9, %s1006_s6 }
  0x44   : > { %p1010_p3 = pneg %p1009_p9  ;;  %p1016_p4 = por %p1015_p5, %p1014_p13 }
  0x46   : > { %p1017_p8 = pnand %p1016_p4, %p1010_p3 }
  0x48   : > { %1020 = shalt.err (!%p1017_p8)
}
  0x49   : > { %868 = dma.hbm_to_vmem [thread:$0]  (!%p1226_p11), %s1224_s8, 128, %s220_s10, %s209_s12  }
  0x4a   : > { %p1369_p10 = scmp.ne.s32.totalorder %s1364_s26, 0 }
  0x4b   : > { %s1247_s13 = sand.u32 (!%p1369_p10), 1, %s1081_s19   ;;  %p1370_p4 = scmp.ne.s32.totalorder (!%p1369_p10), %s1362_s24, 0 }
  0x4c   : > { %228 = sbr.rel (%p1369_p10) target bundleno = 726 (0x2d6), region = 40  ;;  %s723_s14 = sshll.u32 (!%p1369_p10), %s1247_s13, 3 }
  0x4d   : > { %s231_s16 = scalar_lea.sflag (!%p1369_p10), [#allocation3], %s1247_s13  ;;  %s1253_s17 = scalar_lea.vmem (!%p1369_p10), [#allocation2], %s723_s14 }
  0x51   : > { %1064 = dma.done.wait (%p1370_p4), %s231_s16, 128  }
  0x52   : > { %1066 = vsyncadd (%p1370_p4), %s231_s16, 4294967168  ;;  %p1371_p8 = scmp.eq.s32.totalorder %s1150_s22, 0 }
  0x54   : > { %1068 = dma.done.wait (%p1371_p8), [#allocation6], 3072   ;;  %p1372_p3 = pmov %p1371_p8 }
  0x55   : > { %v1096_v0 = vmov 0.0   ;;  %vm1097_vm0 = vmmov 0   ;;  %v917_v1 = vld [vmem:[#allocation5 + $0x38] sm:$0xff]   ;;  %v918_v2 = vld [vmem:[#allocation5 + $0x30] sm:$0xff]   ;;  %v919_v3 = vld [vmem:[#allocation5 + $0x28] sm:$0xff]   ;;  %s756_s30 = sshll.u32 %s1150_s22, 7 }
  0x56   : > { %1070 = vsyncadd (%p1372_p3), [#allocation6], 4294964224  ;;  %786 = vmatprep.subr.bf16.mxu0 %v1096_v0  ;;  %802 = vmatprep.mubr.msk.bf16.mxu0 %vm1097_vm0, %v1096_v0  ;;  %v925_v4 = vld [vmem:[#allocation5 + $0x78] sm:$0xff]   ;;  %v920_v5 = vld [vmem:[#allocation5 + $0x20] sm:$0xff]   ;;  %s268_s29 = scalar_lea.vmem [#allocation8], %s723_s14  ;;  %s1309_s9 = scalar_lea.hbm %s1357_s5, %s756_s30 }
  0x57   : > { %806 = vmatprep.subr.bf16.mxu1 %v1096_v0  ;;  %822 = vmatprep.mubr.msk.bf16.mxu1 %vm1097_vm0, %v1096_v0  ;;  %v926_v6 = vld [vmem:[#allocation5 + $0x70] sm:$0xff]   ;;  %v921_v7 = vld [vmem:[#allocation5 + $0x18] sm:$0xff]   ;;  %v927_v8 = vld [vmem:[#allocation5 + $0x68] sm:$0xff]   ;;  %s626_s6 = sshll.u32 %s268_s29, 4  ;;  %s613_s16 = scalar_lea.sflag [#allocation4], %s1247_s13  ;;  %s1311_s6 = int_to_ptr.vmem [resolvable:$true] %s626_s6 }
  0x58   : > { %787 = vmatpush3.bf16.msra.mxu0 %v917_v1  ;;  %807 = vmatpush3.bf16.msra.mxu1 %v925_v4  ;;  %v922_v9 = vld [vmem:[#allocation5 + $0x10] sm:$0xff]   ;;  %v928_v10 = vld [vmem:[#allocation5 + $0x60] sm:$0xff]   ;;  %v923_v11 = vld [vmem:[#allocation5 + $0x8] sm:$0xff]   ;;  %s1021_s22 = scalar_lea.vmem %s1311_s6, 128  ;;  %p1373_p0 = scmp.ne.s32.totalorder %s1367_s23, 0 }
  0x59   : > { %788 = vmatprep.subr.bf16.mxu0 %v1096_v0  ;;  %808 = vmatprep.subr.bf16.mxu1 %v1096_v0  ;;  %v929_v12 = vld [vmem:[#allocation5 + $0x58] sm:$0xff]   ;;  %v924_v13 = vld [vmem:[#allocation5] sm:$0xff]   ;;  %v930_v15 = vld [vmem:[#allocation5 + $0x50] sm:$0xff]   ;;  %p1022_p11 = scmp.ne.s32.totalorder %s1311_s6, %s1021_s22  ;;  %s1098_s14 = smov [#allocation8]  }
  0x5a   : > { %v270_v14 = vld [vmem:[%s1253_s17] sm:$0xff]  ;;  %v931_v17 = vld [vmem:[#allocation5 + $0x48] sm:$0xff]   ;;  %v932_v18 = vld [vmem:[#allocation5 + $0x40] sm:$0xff]   ;;  %s1025_s17 = sshll.u32 %s1098_s14, 4  ;;  %s1026_s17 = int_to_ptr.vmem [resolvable:$false] %s1025_s17 }
  0x5b   : > { %v271_v16 = vpack.c.bf16 %v270_v14, %v270_v14  ;;  %v933_v19 = vld [vmem:[#allocation7 + $0x38] sm:$0xff]   ;;  %v934_v20 = vld [vmem:[#allocation7 + $0x30] sm:$0xff]   ;;  %v935_v21 = vld [vmem:[#allocation7 + $0x28] sm:$0xff]   ;;  %p1023_p1 = pnand %p1022_p11, %p1373_p0  ;;  %s1027_s24 = scalar_lea.vmem %s1026_s17, 256 }
  0x5c   : > { %789 = vmatpush3.bf16.msra.mxu0 %v918_v2  ;;  %809 = vmatpush3.bf16.msra.mxu1 %v926_v6  ;;  %v936_v22 = vld [vmem:[#allocation7 + $0x20] sm:$0xff]   ;;  %v937_v23 = vld [vmem:[#allocation7 + $0x18] sm:$0xff]   ;;  %v938_v24 = vld [vmem:[#allocation7 + $0x10] sm:$0xff]   ;;  %p1028_p6 = scmp.lt.s32.totalorder %s1311_s6, %s1026_s17  ;;  %p1029_p12 = scmp.lt.s32.totalorder %s1027_s24, %s1021_s22 }
  0x5d   : > { %790 = vmatprep.subr.bf16.mxu0 %v1096_v0  ;;  %810 = vmatprep.subr.bf16.mxu1 %v1096_v0  ;;  %v727_v25 = vld [vmem:[%s1354_s2] ss:$0 sm:$0xff]  ;;  %v939_v33 = vld [vmem:[#allocation7 + $0x8] sm:$0xff]   ;;  %v940_v34 = vld [vmem:[#allocation7] sm:$0xff]   ;;  %p1024_p2 = pneg %p1023_p1 }
  0x5e   : > { %v737_v35 = vld [vmem:[%s1354_s2 + $0x1] ss:$0 sm:$0xff]  ;;  %v746_v43 = vld [vmem:[%s1356_s4] ss:$0 sm:$0xff]  ;;  %p1030_p7 = por %p1029_p12, %p1028_p6 }
  0x60   : > { %791 = vmatpush3.bf16.msra.mxu0 %v919_v3  ;;  %811 = vmatpush3.bf16.msra.mxu1 %v927_v8  ;;  %p1031_p9 = pnand %p1030_p7, %p1024_p2 }
  0x61   : > { %792 = vmatprep.subr.bf16.mxu0 %v1096_v0  ;;  %812 = vmatprep.subr.bf16.mxu1 %v1096_v0 }
  0x64   : > { %793 = vmatpush3.bf16.msra.mxu0 %v920_v5  ;;  %813 = vmatpush3.bf16.msra.mxu1 %v928_v10 }
  0x65   : > { %794 = vmatprep.subr.bf16.mxu0 %v1096_v0  ;;  %814 = vmatprep.subr.bf16.mxu1 %v1096_v0 }
  0x68   : > { %795 = vmatpush3.bf16.msra.mxu0 %v921_v7  ;;  %815 = vmatpush3.bf16.msra.mxu1 %v929_v12 }
  0x69   : > { %796 = vmatprep.subr.bf16.mxu0 %v1096_v0  ;;  %816 = vmatprep.subr.bf16.mxu1 %v1096_v0 }
  0x6c   : > { %797 = vmatpush3.bf16.msra.mxu0 %v922_v9  ;;  %817 = vmatpush3.bf16.msra.mxu1 %v930_v15 }
  0x6d   : > { %798 = vmatprep.subr.bf16.mxu0 %v1096_v0  ;;  %818 = vmatprep.subr.bf16.mxu1 %v1096_v0 }
  0x70   : > { %799 = vmatpush3.bf16.msra.mxu0 %v923_v11  ;;  %819 = vmatpush3.bf16.msra.mxu1 %v931_v17 }
  0x71   : > { %800 = vmatprep.subr.bf16.mxu0 %v1096_v0  ;;  %820 = vmatprep.subr.bf16.mxu1 %v1096_v0 }
  0x74   : > { %801 = vmatpush3.bf16.msra.mxu0 %v924_v13  ;;  %821 = vmatpush3.bf16.msra.mxu1 %v932_v18 }
  0x75   : > { %826 = vmatprep.subr.bf16.mxu0 %v1096_v0 }
  0x77   : > { %803 = vmatmul.mubr.bf16.vlgmr.msra.gmra.mxu0 %v271_v16 }
  0x78   : > { %842 = vmatprep.mubr.msk.bf16.mxu0 %vm1097_vm0, %v1096_v0  ;;  %827 = vmatpush3.bf16.msra.mxu0 %v933_v19 }
  0x79   : > { %828 = vmatprep.subr.bf16.mxu0 %v1096_v0 }
  0x7c   : > { %829 = vmatpush3.bf16.msra.mxu0 %v934_v20 }
  0x7d   : > { %830 = vmatprep.subr.bf16.mxu0 %v1096_v0 }
  0x80   : > { %831 = vmatpush3.bf16.msra.mxu0 %v935_v21 }
  0x81   : > { %832 = vmatprep.subr.bf16.mxu0 %v1096_v0 }
  0x84   : > { %833 = vmatpush3.bf16.msra.mxu0 %v936_v22 }
  0x85   : > { %834 = vmatprep.subr.bf16.mxu0 %v1096_v0 }
  0x88   : > { %835 = vmatpush3.bf16.msra.mxu0 %v937_v23 }
  0x89   : > { %836 = vmatprep.subr.bf16.mxu0 %v1096_v0 }
  0x8c   : > { %837 = vmatpush3.bf16.msra.mxu0 %v938_v24 }
  0x8d   : > { %838 = vmatprep.subr.bf16.mxu0 %v1096_v0 }
  0x90   : > { %839 = vmatpush3.bf16.msra.mxu0 %v939_v33 }
  0x91   : > { %840 = vmatprep.subr.bf16.mxu0 %v1096_v0 }
  0x94   : > { %841 = vmatpush3.bf16.msra.mxu0 %v940_v34 }
 0x137   : > { %v377_v26 = vpop.f32.mrf.mxu0 }
 0x138   : > { %v378_v27 = vadd.f32 %v727_v25, %v377_v26 }
 0x139   : > { %v804_v28 = vpop.f32.mrf.mxu0 }
 0x13a   : > { %v383_v29 = vmax.f32 %v378_v27, 0.0 }
 0x13b   : > { %v380_v30 = vpop.f32.mrf.mxu0 }
 0x13c   : > { %v384_v31 = vpack.c.bf16 %v383_v29, %v383_v29 }
 0x13d   : > { %v805_v32 = vpop.f32.mrf.mxu0 }
 0x13e   : > { %823 = vmatmul.mubr.bf16.vlgmr.msra.gmra.mxu1 %v384_v31 }
 0x1fe   : > { %v492_v36 = vpop.f32.mrf.mxu1 }
 0x1ff   : > { %v493_v37 = vadd.f32 %v737_v35, %v492_v36 }
 0x200   : > { %v824_v38 = vpop.f32.mrf.mxu1 }
 0x201   : > { %v498_v39 = vmax.f32 %v493_v37, 0.0 }
 0x202   : > { %v495_v40 = vpop.f32.mrf.mxu1 }
 0x203   : > { %v499_v41 = vpack.c.bf16 %v498_v39, %v498_v39 }
 0x204   : > { %v825_v42 = vpop.f32.mrf.mxu1 }
 0x205   : > { %843 = vmatmul.mubr.bf16.vlgmr.msra.gmra.mxu0 %v499_v41 }
 0x2c5   : > { %v605_v44 = vpop.f32.mrf.mxu0 }
 0x2c6   : > { %v606_v45 = vadd.f32 %v746_v43, %v605_v44 }
 0x2c7   : > { %v844_v46 = vpop.f32.mrf.mxu0 }
 0x2c8   : > { %611 = vst [vmem:[%s268_s29] sm:$0xff] %v606_v45 }
 0x2c9   : > { %v608_v47 = vpop.f32.mrf.mxu0 }
 0x2ca   : > { %1034 = shalt.err (!%p1031_p9)
}
 0x2cb   : > { %s1035_s26 = scalar_lea.hbm %s1309_s9, 128  ;;  %s1039_s10 = scalar_lea.hbm %s1357_s5, 256 }
 0x2cc   : > { %p1036_p13 = scmp.ne.s32.totalorder %s1309_s9, %s1035_s26  ;;  %p1040_p4 = scmp.lt.s32.totalorder %s1309_s9, %s1357_s5 }
 0x2cd   : > { %p1041_p8 = scmp.lt.s32.totalorder %s1039_s10, %s1035_s26 }
 0x2ce   : > { %p1037_p5 = pnand %p1036_p13, %p1373_p0 }
 0x2cf   : > { %p1042_p3 = por %p1041_p8, %p1040_p4 }
 0x2d0   : > { %p1038_p10 = pneg %p1037_p5 }
 0x2d2   : > { %p1043_p11 = pnand %p1042_p3, %p1038_p10 }
 0x2d4   : > { %1046 = shalt.err (!%p1043_p11)
}
 0x2d5   : > { %856 = dma.vmem_to_hbm [thread:$0]  (%p1373_p0), %s1311_s6, 128, %s1309_s9, %s613_s16   ;;  %v845_v48 = vpop.f32.mrf.mxu0 }
 0x2d6 PF: > { %s638_s30 = sand.u32 1, %s1077_s18   ;;  %p1374_p1 = scmp.ne.s32.totalorder %s1363_s25, 0 }
 0x2d7   : > { %p1375_p2 = scmp.ge.s32.totalorder %s1089_s21, 2  ;;  %s639_s29 = scalar_lea.sflag [#allocation4], %s638_s30 }
 0x2d9   : > { %p870_p6 = pnand %p1375_p2, %p1374_p1 }
 0x2db   : > { %p871_p12 = pneg %p870_p6 }
 0x2dd   : > { %1072 = dma.done.wait (%p871_p12), %s639_s29, 128  }
 0x2de   : > { %1074 = vsyncadd (%p871_p12), %s639_s29, 4294967168  ;;  %p19_p7 = scmp.ge.s32.totalorder %s1201_s15, 4   ;;  %s1376_s18 = smov %s1081_s19 }
 0x2df   : > { %s1377_s19 = smov %s1085_s20  ;;  %s1378_s20 = smov %s1217_s27 }
 0x2e0   : > { %s1379_s21 = smov %s1201_s15  ;;  %21 = sbr.rel (!%p19_p7) target bundleno = 6 (0x6), region = 95 }
 0x2e5   :  { %644 = vsyncpa [#allocation3], 1 }
 0x2e6   :  { %646 = vsyncpa [#allocation3 + $0x1], 1 }
 0x2e7   :  { %647 = vsyncpa [#allocation6], 1 }
 0x2e8   :  { %648 = vsyncpa [#allocation4], 1 }
 0x2e9   :  { %650 = vsyncpa [#allocation4 + $0x1], 1 }

</bundles_post_ra>
